<compile_context>
chip_gen: v5e
topology: v5e:2x2
jax: 0.10.0
libtpu: 0.0.40
codegen_flags: <defaults>
</compile_context>

<pallas_src>
import jax
import jax.numpy as jnp
from jax.experimental import pallas as pl
from jax.experimental.pallas import tpu as pltpu


def _round_up(x, m):
    return ((x + m - 1) // m) * m


def distmult_kernel(e1_ref, rel_ref, wT_ref, out_ref):
    # e1_ref, rel_ref : [B, D]    f32   (full arrays, resident every grid step)
    # wT_ref          : [D, TE]   bf16  (one tile of the pre-transposed table)
    # out_ref         : [B, TE]   f32
    q = (e1_ref[...] * rel_ref[...]).astype(wT_ref.dtype)   # DistMult interaction
    logits = jnp.dot(q, wT_ref[...],                         # MXU-native [M,K]x[K,N]
                     preferred_element_type=jnp.float32)     # f32 accumulate
    out_ref[...] = jax.nn.sigmoid(logits).astype(out_ref.dtype)


def prepare_entity_table(emb_e_weight, dtype=jnp.bfloat16):
    """One-time (init-time) prep: cast + transpose the entity table to [D, E].

    Hoisted out of the forward so the per-call HBM traffic is only the stream
    of the prepared table, not an extra full-table cast/pad round trip.
    """
    return jnp.asarray(emb_e_weight.T, dtype=dtype)


def choose_tile_e(num_entities, preferred_tile_e=8192, min_tiles=4):
    """Multiple of 256, clamped so the grid keeps >= ~min_tiles steps."""
    cap = _round_up(pl.cdiv(num_entities, min_tiles), 256)
    return max(256, min(_round_up(preferred_tile_e, 256), cap))


def distmult_forward(e1_emb, rel_emb, wT_prepared, *, tile_e=None):
    """e1_emb, rel_emb: [B, D] float32; wT_prepared: [D, E] (from prepare_entity_table).

    Returns sigmoid((e1_emb * rel_emb) @ emb_e_weight.T) of shape [B, E].
    """
    B, D = e1_emb.shape
    D_w, E = wT_prepared.shape
    assert D_w == D

    if tile_e is None:
        tile_e = choose_tile_e(E)
    num_tiles = pl.cdiv(E, tile_e)   # last block may be partial; Pallas clips it

    return pl.pallas_call(
        distmult_kernel,
        out_shape=jax.ShapeDtypeStruct((B, E), jnp.float32),
        grid_spec=pltpu.PrefetchScalarGridSpec(
            num_scalar_prefetch=0,
            grid=(num_tiles,),
            in_specs=[
                pl.BlockSpec((B, D), lambda j: (0, 0)),         # e1 embeddings (resident)
                pl.BlockSpec((B, D), lambda j: (0, 0)),         # rel embeddings (resident)
                pl.BlockSpec((D, tile_e), lambda j: (0, j)),    # entity-table tile [K, N]
            ],
            out_specs=pl.BlockSpec((B, tile_e), lambda j: (0, j)),
        ),
        compiler_params=pltpu.CompilerParams(
            dimension_semantics=("parallel",)),                 # E axis shards across TCs on v7x
    )(e1_emb, rel_emb, wT_prepared)


def xavier_normal(key, shape):
    fan_in, fan_out = shape[1], shape[0]
    std = (2.0 / (fan_in + fan_out)) ** 0.5
    return std * jax.random.normal(key, shape, dtype=jnp.float32)


if __name__ == "__main__":
    # Config-equivalent hyperparameters (small, deterministic). num_entities is
    # deliberately NOT a multiple of 256 to exercise the partial-last-block path,
    # and small enough to exercise the min-tiles clamp on tile_e.
    num_entities = 1000
    num_relations = 32
    embedding_dim = 128
    batch = 8

    key = jax.random.PRNGKey(0)
    k_e, k_r, k_i1, k_i2 = jax.random.split(key, 4)

    # Parameters: xavier_normal_ init, padding_idx=0 row zeroed (as nn.Embedding does).
    emb_e = xavier_normal(k_e, (num_entities, embedding_dim)).at[0].set(0.0)
    emb_rel = xavier_normal(k_r, (num_relations, embedding_dim)).at[0].set(0.0)

    # One-time table prep (bf16 + transpose), done at "init" — not per forward call.
    wT = prepare_entity_table(emb_e)                      # [D, E] bf16
    wT = jax.block_until_ready(wT)

    # Inputs: integer indices, shape [B, 1] (squeezed in forward).
    e1 = jax.random.randint(k_i1, (batch, 1), 0, num_entities, dtype=jnp.int32)
    rel = jax.random.randint(k_i2, (batch, 1), 0, num_relations, dtype=jnp.int32)

    # Glue: embedding lookup + squeeze.
    # TODO(synk): torch.nn.Dropout(input_dropout) on e1/rel embeddings is only
    # implemented in eval mode (identity); train-mode dropout is not translated.
    e1_emb = jnp.take(emb_e, e1.squeeze(-1), axis=0)      # [B, D]
    rel_emb = jnp.take(emb_rel, rel.squeeze(-1), axis=0)  # [B, D]

    pred = distmult_forward(e1_emb, rel_emb, wT)
    pred = jax.block_until_ready(pred)

    # Reference check in plain JAX (f32). The kernel streams the table in bf16,
    # so allow a bf16-level tolerance on the (bounded-in-[0,1]) sigmoid output.
    ref = jax.nn.sigmoid((e1_emb * rel_emb) @ emb_e.T)
    assert pred.shape == (batch, num_entities)
    assert jnp.allclose(pred, ref, atol=2e-2), "mismatch vs reference"

    print("KERNEL_OK")
</pallas_src>

<mosaic_0001>
module attributes {stable_mosaic.version = 11 : i64} {
  func.func @distmult_kernel(%arg0: i32, %arg1: memref<8x128xf32, #tpu.memory_space<vmem>>, %arg2: memref<8x128xf32, #tpu.memory_space<vmem>>, %arg3: memref<128x256xbf16, #tpu.memory_space<vmem>>, %arg4: memref<8x256xf32, #tpu.memory_space<vmem>>) attributes {dimension_semantics = [#tpu.dimension_semantics<parallel>], iteration_bounds = array<i64: 4>, scalar_prefetch = 0 : i64, scratch_operands = 0 : i64, tpu.core_type = #tpu.core_type<tc>, window_params = [{pipeline_mode = #tpu.pipeline_mode<synchronous>, transform_indices = @transform_0, window_bounds = array<i64: 8, 128>}, {pipeline_mode = #tpu.pipeline_mode<synchronous>, transform_indices = @transform_1, window_bounds = array<i64: 8, 128>}, {transform_indices = @transform_2, window_bounds = array<i64: 128, 256>}, {transform_indices = @transform_3, window_bounds = array<i64: 8, 256>}]} {
    %c0 = arith.constant 0 : index
    %c0_0 = arith.constant 0 : index
    %0 = vector.load %arg1[%c0, %c0_0] : memref<8x128xf32, #tpu.memory_space<vmem>>, vector<8x128xf32>
    %c0_1 = arith.constant 0 : index
    %c0_2 = arith.constant 0 : index
    %1 = vector.load %arg2[%c0_1, %c0_2] : memref<8x128xf32, #tpu.memory_space<vmem>>, vector<8x128xf32>
    %2 = arith.mulf %0, %1 : vector<8x128xf32>
    %3 = arith.truncf %2 : vector<8x128xf32> to vector<8x128xbf16>
    %c0_3 = arith.constant 0 : index
    %c0_4 = arith.constant 0 : index
    %4 = vector.load %arg3[%c0_3, %c0_4] : memref<128x256xbf16, #tpu.memory_space<vmem>>, vector<128x256xbf16>
    %cst = arith.constant dense<0.000000e+00> : vector<8x256xf32>
    %5 = tpu.matmul %3, %4, %cst {dimension_numbers = #tpu.dot_dimension_numbers<[1], [0], [0], [1], [0, 0, 1, 1], [], []>} : vector<8x128xbf16>, vector<128x256xbf16>, vector<8x256xf32> -> vector<8x256xf32>
    %6 = arith.negf %5 : vector<8x256xf32>
    %7 = math.exp %6 : vector<8x256xf32>
    %cst_5 = arith.constant 1.000000e+00 : f32
    %8 = vector.broadcast %cst_5 : f32 to vector<8x256xf32>
    %9 = arith.addf %8, %7 : vector<8x256xf32>
    %10 = arith.divf %8, %9 : vector<8x256xf32>
    %c0_6 = arith.constant 0 : index
    %c0_7 = arith.constant 0 : index
    %11 = vector.load %arg4[%c0_6, %c0_7] : memref<8x256xf32, #tpu.memory_space<vmem>>, vector<8x256xf32>
    tpu.vector_store %arg4[%c0_6, %c0_7], %10 {strides = array<i32>} : memref<8x256xf32, #tpu.memory_space<vmem>>, vector<8x256xf32>,
    return
  }
  func.func @transform_0(%arg0: i32) -> (i32, i32) {
    %c0_i32 = arith.constant 0 : i32
    %c0_i32_0 = arith.constant 0 : i32
    %c0_i32_1 = arith.constant 0 : i32
    return %c0_i32, %c0_i32_0 : i32, i32
  }
  func.func @transform_1(%arg0: i32) -> (i32, i32) {
    %c0_i32 = arith.constant 0 : i32
    %c0_i32_0 = arith.constant 0 : i32
    %c0_i32_1 = arith.constant 0 : i32
    return %c0_i32, %c0_i32_0 : i32, i32
  }
  func.func @transform_2(%arg0: i32) -> (i32, i32) {
    %c0_i32 = arith.constant 0 : i32
    %c0_i32_0 = arith.constant 0 : i32
    return %c0_i32, %arg0 : i32, i32
  }
  func.func @transform_3(%arg0: i32) -> (i32, i32) {
    %c0_i32 = arith.constant 0 : i32
    %c0_i32_0 = arith.constant 0 : i32
    return %c0_i32, %arg0 : i32, i32
  }
}

</mosaic_0001>

<bundles_post_ra>
// kernel: tpu_custom_call.1
= control target key start
LH: loop header
LB: loop body
LE: loop exit
PB: predicated region body
PF: predicated region fallthrough
CT: control target
= control target key end

     0   :  { %8 = vsyncpa [#allocation4], 0  ;;  %s897_s0 = inlined_call_operand.vmem [shape: f32[8,128], index: 0, kind: input, shape index: {}]   ;;  %s898_s1 = inlined_call_operand.vmem [shape: f32[8,128], index: 1, kind: input, shape index: {}]   ;;  %s899_s2 = inlined_call_operand.vmem [shape: bf16[128,1000], index: 2, kind: input, shape index: {}]   ;;  %s900_s3 = inlined_call_operand.hbm [shape: f32[8,1000], index: 3, kind: output, shape index: {}]  }
   0x1   :  { %10 = vsyncpa [#allocation4 + $0x1], 0  ;;  %s744_s12 = smov 0   ;;  %s746_s13 = smov 0  }
   0x2   :  { %s748_s14 = smov 0   ;;  %s750_s15 = smov 0  }
   0x3 LB: > { %s514_s16 = sadd.s32 4294967295, %s722_s15   ;;  %s515_s17 = sadd.s32 4294967294, %s722_s15   ;;  %s722_s15 = sphi %s750_s15, %s906_s15   ;;  %s718_s14 = sphi %s748_s14, %s905_s14   ;;  %s714_s13 = sphi %s746_s13, %s904_s13   ;;  %s710_s12 = sphi %s744_s12, %s903_s12  }
   0x4   : > { %s767_s18 = sadd.s32 1, %s722_s15   ;;  %s65_s19 = sadd.s32 1, %s718_s14 }
   0x5   : > { %s62_s20 = ssub.s32 %s722_s15, %s767_s18  ;;  %p72_p0 = scmp.ne.s32.totalorder %s718_s14, %s714_s13 }
   0x6   : > { %p63_p1 = scmp.eq.s32.totalorder %s62_s20, 0  ;;  %p73_p2 = scmp.eq.s32.totalorder %s722_s15, 0 }
   0x7   : > { %p102_p3 = scmp.eq.s32.totalorder %s514_s16, 3  ;;  %p107_p4 = scmp.ne.s32.totalorder %s714_s13, %s710_s12 }
   0x8   : > { %s780_s21 = scalar_select %p63_p1, %s718_s14, %s65_s19  }
   0x9   : > { %p74_p5 = por %p73_p2, %p72_p0  ;;  %p782_p6 = por %p102_p3, %p72_p0 }
   0xa   : > { %p108_p7 = scmp.eq.s32.totalorder %s515_s17, 3  ;;  %p517_p9 = scmp.ge.s32.totalorder %s722_s15, 4 }
   0xc   : > { %p786_p8 = por %p108_p7, %p107_p4  ;;  %130 = sbr.rel (%p517_p9) target bundleno = 37 (0x25), region = 24 }
  0x11   : > { %133 = sbr.rel (!%p74_p5) target bundleno = 37 (0x25), region = 28  ;;  %s135_s24 = sand.u32 (%p74_p5), 1, %s718_s14  }
  0x12   : > { %s595_s25 = sshll.u32 (%p74_p5), %s722_s15, 3  ;;  %s518_s26 = sshll.u32 (%p74_p5), %s135_s24, 7 }
  0x13   : > { %s796_s29 = scalar_lea.vmem (%p74_p5), %s899_s2, %s595_s25  ;;  %s137_s30 = scalar_lea.vmem (%p74_p5), [#allocation2], %s518_s26 }
  0x14   : > { %v199_v0 = vld [vmem:[%s796_s29] sm:$0xff] (%p74_p5) }
  0x15   : > { %v201_v1 = vld [vmem:[%s796_s29 + $0x20] sm:$0xff] (%p74_p5)  ;;  %200 = vst [vmem:[%s137_s30] sm:$0xff] (%p74_p5), %v199_v0 }
  0x16   : > { %v203_v2 = vld [vmem:[%s796_s29 + $0x40] sm:$0xff]  ;;  %202 = vst [vmem:[%s137_s30 + $0x8] sm:$0xff] %v201_v1 }
  0x17   : > { %v205_v3 = vld [vmem:[%s796_s29 + $0x60] sm:$0xff]  ;;  %204 = vst [vmem:[%s137_s30 + $0x10] sm:$0xff] %v203_v2 }
  0x18   : > { %v207_v4 = vld [vmem:[%s796_s29 + $0x80] sm:$0xff]  ;;  %206 = vst [vmem:[%s137_s30 + $0x18] sm:$0xff] %v205_v3 }
  0x19   : > { %v209_v5 = vld [vmem:[%s796_s29 + $0xa0] sm:$0xff]  ;;  %208 = vst [vmem:[%s137_s30 + $0x20] sm:$0xff] %v207_v4 }
  0x1a   : > { %v211_v6 = vld [vmem:[%s796_s29 + $0xc0] sm:$0xff]  ;;  %210 = vst [vmem:[%s137_s30 + $0x28] sm:$0xff] %v209_v5 }
  0x1b   : > { %v213_v7 = vld [vmem:[%s796_s29 + $0xe0] sm:$0xff]  ;;  %212 = vst [vmem:[%s137_s30 + $0x30] sm:$0xff] %v211_v6 }
  0x1c   : > { %v215_v8 = vld [vmem:[%s796_s29 + $0x100] sm:$0xff]  ;;  %214 = vst [vmem:[%s137_s30 + $0x38] sm:$0xff] %v213_v7 }
  0x1d   : > { %v217_v9 = vld [vmem:[%s796_s29 + $0x120] sm:$0xff]  ;;  %216 = vst [vmem:[%s137_s30 + $0x40] sm:$0xff] %v215_v8 }
  0x1e   : > { %v219_v10 = vld [vmem:[%s796_s29 + $0x140] sm:$0xff]  ;;  %218 = vst [vmem:[%s137_s30 + $0x48] sm:$0xff] %v217_v9 }
  0x1f   : > { %v221_v11 = vld [vmem:[%s796_s29 + $0x160] sm:$0xff]  ;;  %220 = vst [vmem:[%s137_s30 + $0x50] sm:$0xff] %v219_v10 }
  0x20   : > { %v223_v12 = vld [vmem:[%s796_s29 + $0x180] sm:$0xff]  ;;  %222 = vst [vmem:[%s137_s30 + $0x58] sm:$0xff] %v221_v11 }
  0x21   : > { %v225_v13 = vld [vmem:[%s796_s29 + $0x1a0] sm:$0xff]  ;;  %224 = vst [vmem:[%s137_s30 + $0x60] sm:$0xff] %v223_v12 }
  0x22   : > { %v227_v14 = vld [vmem:[%s796_s29 + $0x1c0] sm:$0xff]  ;;  %226 = vst [vmem:[%s137_s30 + $0x68] sm:$0xff] %v225_v13 }
  0x23   : > { %v229_v15 = vld [vmem:[%s796_s29 + $0x1e0] sm:$0xff]  ;;  %228 = vst [vmem:[%s137_s30 + $0x70] sm:$0xff] %v227_v14 }
  0x24   : > { %230 = vst [vmem:[%s137_s30 + $0x78] sm:$0xff] %v229_v15 }
  0x25 PF: > { %p521_p10 = scmp.ge.s32.totalorder %s722_s15, 1  ;;  %p235_p11 = scmp.lt.s32.totalorder %s722_s15, 5 }
  0x27   : > { %p236_p12 = pnand %p521_p10, %p235_p11 }
  0x28   : > { %s817_s4 = sand.u32 (!%p236_p12), 1, %s714_s13   ;;  %s612_s17 = sshll.u32 (!%p236_p12), %s514_s16, 4 }
  0x29   : > { %239 = sbr.rel (%p236_p12) target bundleno = 238 (0xee), region = 66  ;;  %s522_s5 = sshll.u32 (!%p236_p12), %s817_s4, 7 }
  0x2a   : > { %s820_s6 = scalar_lea.vmem (!%p236_p12), [#allocation2], %s522_s5  ;;  %s523_s11 = sshll.u32 (!%p236_p12), %s817_s4, 4 }
  0x2b   : > { %s445_s24 = scalar_lea.hbm (!%p236_p12), %s900_s3, %s612_s17  ;;  %s264_s25 = scalar_lea.vmem (!%p236_p12), [#allocation3], %s523_s11 }
  0x2c   : > { %s447_s26 = sshll.u32 (!%p236_p12), %s264_s25, 4  ;;  %s866_s16 = sshll.u32 (!%p236_p12), %s445_s24, 4  ;;  %s448_s26 = int_to_ptr.vmem [resolvable:$true] %s447_s26  ;;  %s450_s16 = int_to_ptr.hbm [resolvable:$true] %s866_s16 }
  0x2d   : > { %s434_s27 = scalar_lea.sflag (!%p236_p12), [#allocation4], %s817_s4  ;;  %s674_s28 = sshra.s32 (!%p236_p12), %s450_s16, 4  ;;  %s675_s28 = int_to_ptr.hbm [resolvable:$true] %s674_s28 }
  0x2e   : > { %v582_v16 = vld [vmem:[%s820_s6 + $0x70] sm:$0xf]  ;;  %v611_v17 = vld [vmem:[%s820_s6 + $0x74] sm:$0xf0]  ;;  %v610_v18 = vld [vmem:[%s820_s6 + $0x74] sm:$0xf]  ;;  %p681_p2 = scmp.lt.s32.totalorder %s675_s28, %s900_s3 }
  0x2f   : > { %v583_v19 = vor.u32 %v611_v17, %v582_v16  ;;  %v584_v20 = vld [vmem:[%s820_s6 + $0x78] sm:$0xf0]  ;;  %v574_v21 = vld [vmem:[%s820_s6 + $0x60] sm:$0xf]  ;;  %v609_v22 = vld [vmem:[%s820_s6 + $0x64] sm:$0xf0] }
  0x30   : > { %v587_v23 = vor.u32 %v610_v18, %v584_v20  ;;  %v608_v24 = vld [vmem:[%s820_s6 + $0x64] sm:$0xf]  ;;  %v576_v25 = vld [vmem:[%s820_s6 + $0x68] sm:$0xf0]  ;;  %v575_v26 = vor.u32 %v609_v22, %v574_v21  ;;  %v566_v28 = vld [vmem:[%s820_s6 + $0x50] sm:$0xf] }
  0x31   : > { %367 = vmatpush.bf16.msra.mxu0 %v583_v19  ;;  %v579_v27 = vor.u32 %v608_v24, %v576_v25  ;;  %v607_v29 = vld [vmem:[%s820_s6 + $0x54] sm:$0xf0]  ;;  %v606_v30 = vld [vmem:[%s820_s6 + $0x54] sm:$0xf]  ;;  %v568_v31 = vld [vmem:[%s820_s6 + $0x58] sm:$0xf0] }
  0x32   : > { %380 = vmatpush.bf16.msra.mxu1 %v587_v23  ;;  %v567_v32 = vor.u32 %v607_v29, %v566_v28  ;;  %v571_v33 = vor.u32 %v606_v30, %v568_v31  ;;  %v558_v34 = vld [vmem:[%s820_s6 + $0x40] sm:$0xf]  ;;  %v605_v35 = vld [vmem:[%s820_s6 + $0x44] sm:$0xf0]  ;;  %v604_v36 = vld [vmem:[%s820_s6 + $0x44] sm:$0xf] }
  0x33   : > { %v560_v37 = vld [vmem:[%s820_s6 + $0x48] sm:$0xf0]  ;;  %v559_v38 = vor.u32 %v605_v35, %v558_v34  ;;  %v550_v40 = vld [vmem:[%s820_s6 + $0x30] sm:$0xf]  ;;  %v603_v41 = vld [vmem:[%s820_s6 + $0x34] sm:$0xf0] }
  0x34   : > { %v563_v39 = vor.u32 %v604_v36, %v560_v37  ;;  %v602_v42 = vld [vmem:[%s820_s6 + $0x34] sm:$0xf]  ;;  %v552_v43 = vld [vmem:[%s820_s6 + $0x38] sm:$0xf0]  ;;  %v551_v44 = vor.u32 %v603_v41, %v550_v40  ;;  %v542_v46 = vld [vmem:[%s820_s6 + $0x20] sm:$0xf] }
  0x35   : > { %368 = vmatpush.bf16.msra.mxu0 %v575_v26  ;;  %v555_v45 = vor.u32 %v602_v42, %v552_v43  ;;  %v601_v47 = vld [vmem:[%s820_s6 + $0x24] sm:$0xf0]  ;;  %v600_v48 = vld [vmem:[%s820_s6 + $0x24] sm:$0xf]  ;;  %v544_v49 = vld [vmem:[%s820_s6 + $0x28] sm:$0xf0] }
  0x36   : > { %381 = vmatpush.bf16.msra.mxu1 %v579_v27  ;;  %v543_v50 = vor.u32 %v601_v47, %v542_v46  ;;  %v547_v51 = vor.u32 %v600_v48, %v544_v49  ;;  %v534_v52 = vld [vmem:[%s820_s6 + $0x10] sm:$0xf]  ;;  %v599_v53 = vld [vmem:[%s820_s6 + $0x14] sm:$0xf0]  ;;  %v598_v54 = vld [vmem:[%s820_s6 + $0x14] sm:$0xf] }
  0x37   : > { %v536_v55 = vld [vmem:[%s820_s6 + $0x18] sm:$0xf0]  ;;  %v535_v56 = vor.u32 %v599_v53, %v534_v52  ;;  %v267_v57 = vld [vmem:[%s897_s0] sm:$0xff]  ;;  %v597_v61 = vld [vmem:[%s820_s6 + $0x4] sm:$0xf0]  ;;  %s676_s29 = scalar_lea.hbm %s675_s28, 16 }
  0x38   : > { %v268_v58 = vld [vmem:[%s898_s1] sm:$0xff]  ;;  %v539_v59 = vor.u32 %v598_v54, %v536_v55  ;;  %v528_v63 = vld [vmem:[%s820_s6 + $0x8] sm:$0xf0]  ;;  %p677_p13 = scmp.ne.s32.totalorder %s675_s28, %s676_s29 }
  0x39   : > { %369 = vmatpush.bf16.msra.mxu0 %v567_v32  ;;  %v526_v60 = vld [vmem:[%s820_s6] sm:$0xf]  ;;  %v596_v62 = vld [vmem:[%s820_s6 + $0x4] sm:$0xf]  ;;  %v269_v0 = vmul.f32 %v268_v58, %v267_v57  ;;  %s680_s6 = scalar_lea.hbm %s900_s3, 64 }
  0x3a   : > { %382 = vmatpush.bf16.msra.mxu1 %v571_v33  ;;  %v527_v1 = vor.u32 %v597_v61, %v526_v60  ;;  %v531_v2 = vor.u32 %v596_v62, %v528_v63  ;;  %p678_p0 = pnand %p677_p13, %p782_p6  ;;  %p682_p3 = scmp.lt.s32.totalorder %s680_s6, %s676_s29 }
  0x3b   : > { %v270_v3 = vpack.c.bf16 %v269_v0, %v269_v0 }
  0x3c   : > { %p679_p1 = pneg %p678_p0  ;;  %p683_p4 = por %p682_p3, %p681_p2 }
  0x3d   : > { %370 = vmatpush.bf16.msra.mxu0 %v559_v38 }
  0x3e   : > { %383 = vmatpush.bf16.msra.mxu1 %v563_v39  ;;  %p684_p5 = pnand %p683_p4, %p679_p1 }
  0x41   : > { %371 = vmatpush.bf16.msra.mxu0 %v551_v44 }
  0x42   : > { %384 = vmatpush.bf16.msra.mxu1 %v555_v45 }
  0x45   : > { %372 = vmatpush.bf16.msra.mxu0 %v543_v50 }
  0x46   : > { %385 = vmatpush.bf16.msra.mxu1 %v547_v51 }
  0x49   : > { %373 = vmatpush.bf16.msra.mxu0 %v535_v56 }
  0x4a   : > { %386 = vmatpush.bf16.msra.mxu1 %v539_v59 }
  0x4d   : > { %374 = vmatpush.bf16.msra.mxu0 %v527_v1 }
  0x4e   : > { %387 = vmatpush.bf16.msra.mxu1 %v531_v2 }
  0x50   : > { %375 = vmatmul.bf16.vlgmr.msra.gmra.mxu0 %v270_v3 }
  0x51   : > { %388 = vmatmul.bf16.vlgmr.msra.gmra.mxu1 %v270_v3 }
  0xcd   : > { %v376_v4 = vpop.f32.mrf.mxu0 }
  0xce   : > { %v588_v5 = vmul.f32 -1.442695, %v376_v4  ;;  %v389_v6 = vpop.f32.mrf.mxu1 }
  0xcf   : > { %v589_v7 = vmul.f32 -1.442695, %v389_v6 }
  0xd0   : > { %652 = vpow2.f32 %v588_v5 }
  0xd1   : > { %654 = vpow2.f32 %v589_v7 }
  0xd5   : > { %v378_v8 = vpop.f32.mrf.mxu0 }
  0xd6   : > { %v653_v9 = vpop.eup %652  ;;  %v391_v10 = vpop.f32.mrf.mxu1 }
  0xd7   : > { %v655_v11 = vpop.eup %654  ;;  %v399_v12 = vadd.f32 1.0, %v653_v9 }
  0xd8   : > { %v400_v13 = vadd.f32 1.0, %v655_v11 }
  0xd9   : > { %656 = vrcp.f32 %v399_v12  ;;  %v412_v20 = vand.u32 2147483648, %v399_v12  ;;  %v410_v22 = vand.u32 2147483647, %v399_v12  ;;  %vm406_vm2 = vweird.f32 %v399_v12 }
  0xda   : > { %658 = vrcp.f32 %v400_v13  ;;  %v427_v23 = vand.u32 2147483648, %v400_v13  ;;  %v425_v25 = vand.u32 2147483647, %v400_v13  ;;  %vm421_vm4 = vweird.f32 %v400_v13 }
  0xdb   : > { %v413_v27 = vor.u32 1.1754944e-38, %v412_v20  ;;  %vm411_vm5 = vcmp.eq.f32.partialorder %v410_v22, 8.507059e+37 }
  0xdc   : > { %v428_v30 = vor.u32 1.1754944e-38, %v427_v23  ;;  %vm426_vm7 = vcmp.eq.f32.partialorder %v425_v25, 8.507059e+37 }
  0xdf   : > { %v657_v14 = vpop.eup %656 }
  0xe0   : > { %v659_v15 = vpop.eup %658  ;;  %v402_v16 = vmul.f32 %v657_v14, %v399_v12  ;;  %vm407_vm0 = vweird.f32 %v657_v14 }
  0xe1   : > { %v417_v17 = vmul.f32 %v659_v15, %v400_v13  ;;  %vm422_vm1 = vweird.f32 %v659_v15  ;;  %vm408_vm3 = vmor %vm406_vm2, %vm407_vm0 }
  0xe2   : > { %v403_v18 = vsub.f32 1.0, %v402_v16  ;;  %vm423_vm6 = vmor %vm421_vm4, %vm422_vm1 }
  0xe3   : > { %v418_v19 = vsub.f32 1.0, %v417_v17 }
  0xe4   : > { %v404_v21 = vmul.f32 %v657_v14, %v403_v18 }
  0xe5   : > { %v419_v24 = vmul.f32 %v659_v15, %v418_v19 }
  0xe6   : > { %v405_v26 = vadd.f32 %v657_v14, %v404_v21 }
  0xe7   : > { %v420_v28 = vadd.f32 %v659_v15, %v419_v24 }
  0xe8   : > { %v409_v29 = vsel %vm408_vm3, %v657_v14, %v405_v26 }
  0xe9   : > { %v414_v31 = vsel %vm411_vm5, %v413_v27, %v409_v29  ;;  %v424_v32 = vsel %vm423_vm6, %v659_v15, %v420_v28 }
  0xea   : > { %v429_v33 = vsel %vm426_vm7, %v428_v30, %v424_v32  ;;  %431 = vst [vmem:[%s264_s25] sm:$0xff] %v414_v31 }
  0xeb   : > { %432 = vst [vmem:[%s264_s25 + $0x8] sm:$0xff] %v429_v33 }
  0xec   : > { %687 = shalt.err (!%p684_p5)
}
  0xed   : > { %613 = dma.vmem_to_hbm [thread:$0]  (%p782_p6), %s448_s26, 256, %s450_s16, %s434_s27  }
  0xee PF: > { %p619_p7 = scmp.ge.s32.totalorder %s722_s15, 2  ;;  %s461_s4 = sand.u32 1, %s710_s12  }
  0xef   : > { %s462_s9 = scalar_lea.sflag [#allocation4], %s461_s4 }
  0xf0   : > { %p616_p9 = pnand %p619_p7, %p786_p8 }
  0xf2   : > { %p617_p10 = pneg %p616_p9 }
  0xf4   : > { %705 = dma.done.wait (%p617_p10), %s462_s9, 256  }
  0xf5   : > { %707 = vsyncadd (%p617_p10), %s462_s9, 4294967040  ;;  %p13_p11 = scmp.ge.s32.totalorder %s767_s18, 6   ;;  %s903_s12 = smov %s714_s13 }
  0xf6   : > { %s904_s13 = smov %s718_s14  ;;  %s905_s14 = smov %s780_s21 }
  0xf7   : > { %s906_s15 = smov %s767_s18  ;;  %15 = sbr.rel (!%p13_p11) target bundleno = 3 (0x3), region = 110 }
  0xfc   :  { %468 = vsyncpa [#allocation4], 1 }
  0xfd   :  { %470 = vsyncpa [#allocation4 + $0x1], 1 }

</bundles_post_ra>
